<compile_context>
chip_gen: v7x
topology: tpu7x:2x2x1
jax: 0.10.0
libtpu: 0.0.40
codegen_flags: <defaults>
</compile_context>

<pallas_src>
import functools

import jax
import jax.numpy as jnp
import numpy as np
from jax import lax
from jax.experimental import pallas as pl
from jax.experimental.pallas import tpu as pltpu


def _tile_and_pad(n, max_tile):
    """Tile size + padded length along N. Small n -> one full-dim block;
    otherwise a fixed tile with n padded up (padding masked / sliced off)."""
    if n <= max_tile:
        return n, n
    t = max_tile
    return t, -(-n // t) * t


# --------------------------------------------------------------------------
# Kernel 1: pairwise distance tile + running top-k merge.
#   grid (B, N/t, N/t); j (candidate tiles) is the trailing "arbitrary" axis.
#   Scratch bv/bi hold the k best (distance, index) per row; output is the
#   [B, N, k] int32 neighbour indices, written at the last j step.
# --------------------------------------------------------------------------
def _knn_topk_kernel(n_valid, xi_ref, xj_ref, xjsq_ref, idx_ref, bv_ref, bi_ref):
    i = pl.program_id(1)
    j = pl.program_id(2)
    k = bv_ref.shape[1]

    @pl.when(j == 0)
    def _():
        bv_ref[...] = jnp.full(bv_ref.shape, jnp.inf, bv_ref.dtype)
        bi_ref[...] = jnp.zeros(bi_ref.shape, bi_ref.dtype)

    xi = xi_ref[0]                                       # (ti, Fin)
    xj = xj_ref[0]                                       # (tj, Fin)
    ti, tj = xi.shape[0], xj.shape[0]

    # Row-wise ranking key: |x_i - x_j|^2 - |x_i|^2 = -2<x_i, x_j> + |x_j|^2.
    # dot_general contracts dim 1 of both operands -> no transpose copy of xj.
    gram = lax.dot_general(xi, xj, (((1,), (1,)), ((), ())),
                           preferred_element_type=jnp.float32)
    d = -2.0 * gram + xjsq_ref[0]                        # (ti, tj)

    rows = lax.broadcasted_iota(jnp.int32, (ti, tj), 0) + i * ti
    cols = lax.broadcasted_iota(jnp.int32, (ti, tj), 1) + j * tj
    d = jnp.where((rows == cols) | (cols >= n_valid), jnp.inf, d)

    # Merge this tile into the running top-k.  The tile goes first so the small
    # (ti, k) running set lands at a lane-aligned offset.  Indices are carried
    # as exact f32 so every lane reduction stays in f32; cast to int32 only on
    # the final store.
    vals = jnp.concatenate([d, bv_ref[...]], axis=1)                  # (ti, tj+k)
    idxs = jnp.concatenate([cols.astype(jnp.float32), bi_ref[...]], axis=1)
    new_v, new_i = [], []
    for _ in range(k):                                   # k static, unrolled
        m = jnp.min(vals, axis=1, keepdims=True)                      # (ti, 1)
        hit = vals == m
        sel = jnp.min(jnp.where(hit, idxs, jnp.inf), axis=1, keepdims=True)
        new_v.append(m)
        new_i.append(sel)
        vals = jnp.where(hit & (idxs == sel), jnp.inf, vals)
    bv_ref[...] = jnp.concatenate(new_v, axis=1)
    bi_ref[...] = jnp.concatenate(new_i, axis=1)

    @pl.when(j == pl.num_programs(2) - 1)
    def _():
        idx_ref[0] = bi_ref[...].astype(jnp.int32)


def knn_indices(x, k, max_tile=512):
    B, N, Fin = x.shape
    assert 1 <= k <= N - 1, "need at least k non-self neighbours"
    t, Np = _tile_and_pad(N, max_tile)
    xp = x if Np == N else jnp.pad(x, ((0, 0), (0, Np - N), (0, 0)))
    xsq = jnp.sum(xp * xp, axis=-1)[:, None, :]          # (B, 1, Np), hoisted

    idx = pl.pallas_call(
        functools.partial(_knn_topk_kernel, N),
        out_shape=jax.ShapeDtypeStruct((B, Np, k), jnp.int32),
        grid=(B, Np // t, Np // t),
        in_specs=[
            pl.BlockSpec((1, t, Fin), lambda b, i, j: (b, i, 0)),   # row tile
            pl.BlockSpec((1, t, Fin), lambda b, i, j: (b, j, 0)),   # col tile
            pl.BlockSpec((1, 1, t), lambda b, i, j: (b, 0, j)),     # |x_j|^2
        ],
        out_specs=pl.BlockSpec((1, t, k), lambda b, i, j: (b, i, 0)),
        scratch_shapes=[pltpu.VMEM((t, k), jnp.float32),            # best dist
                        pltpu.VMEM((t, k), jnp.float32)],           # best idx
        compiler_params=pltpu.CompilerParams(
            dimension_semantics=("parallel", "parallel", "arbitrary")),
    )(xp, xp, xsq)
    return idx if Np == N else idx[:, :N, :]


# --------------------------------------------------------------------------
# Kernel 2: fused edge linear + max-over-k + bias, tiled over (B, N/t).
#   xn is the gathered neighbour inputs in k-major layout [B, k, N, Fin].
# --------------------------------------------------------------------------
def _edge_linear_max_kernel(x_ref, xn_ref, wcd_ref, wd_ref, b_ref, o_ref):
    x_t = x_ref[0]                                       # (t, Fin)
    wcd = wcd_ref[...]
    wd = wd_ref[...]
    k = xn_ref.shape[1]

    acc = jnp.dot(x_t, wcd, preferred_element_type=jnp.float32) + b_ref[...]
    m = jnp.dot(xn_ref[0, 0], wd, preferred_element_type=jnp.float32)
    for kk in range(1, k):                               # k static, small
        m = jnp.maximum(
            m, jnp.dot(xn_ref[0, kk], wd, preferred_element_type=jnp.float32))
    o_ref[0] = (acc + m).astype(o_ref.dtype)


def edge_linear_max(x, xn, wcd, wd, b2d, max_tile=256):
    B, N, Fin = x.shape
    k = xn.shape[1]
    Fp = wcd.shape[1]
    t, Np = _tile_and_pad(N, max_tile)
    if Np != N:
        x = jnp.pad(x, ((0, 0), (0, Np - N), (0, 0)))
        xn = jnp.pad(xn, ((0, 0), (0, 0), (0, Np - N), (0, 0)))

    out = pl.pallas_call(
        _edge_linear_max_kernel,
        out_shape=jax.ShapeDtypeStruct((B, Np, Fp), jnp.float32),
        grid=(B, Np // t),
        in_specs=[
            pl.BlockSpec((1, t, Fin), lambda b, i: (b, i, 0)),
            pl.BlockSpec((1, k, t, Fin), lambda b, i: (b, 0, i, 0)),
            pl.BlockSpec((Fin, Fp), lambda b, i: (0, 0)),
            pl.BlockSpec((Fin, Fp), lambda b, i: (0, 0)),
            pl.BlockSpec((1, Fp), lambda b, i: (0, 0)),
        ],
        out_specs=pl.BlockSpec((1, t, Fp), lambda b, i: (b, i, 0)),
        compiler_params=pltpu.CompilerParams(
            dimension_semantics=("parallel", "parallel")),
    )(x, xn, wcd, wd, b2d)
    return out if Np == N else out[:, :N, :]


# --------------------------------------------------------------------------
# edgeConv forward: [B, N, Fin] -> [B, N, Fout]
# --------------------------------------------------------------------------
def edge_conv_forward(x, w, b, k):
    B, N, Fin = x.shape
    Fout = w.shape[1]

    # Split the Linear:  concat(x_i, x_j - x_i) @ W == x_i@(Wc - Wd) + x_j@Wd.
    w_c, w_d = w[:Fin], w[Fin:]
    # Pad to a lane-dense width only when Fout is already >= 128; for small
    # Fout the extra HBM traffic of padding outweighs masked stores.
    Fp = -(-Fout // 128) * 128 if Fout >= 128 else Fout
    wcd = jnp.pad(w_c - w_d, ((0, 0), (0, Fp - Fout)))
    wd = jnp.pad(w_d, ((0, 0), (0, Fp - Fout)))
    bp = jnp.pad(b, (0, Fp - Fout)).reshape(1, Fp)

    idx = knn_indices(x, k)                              # Pallas kernel 1

    # Gather neighbour *inputs* (Fin-wide) into k-major layout; only k*N*Fin
    # values per batch, so a plain XLA take is fine and the Wd matmul happens
    # inside kernel 2 (no [B,k,N,Fout] tensor in HBM).
    # TODO(synk): move this gather in-kernel (VMEM-resident x[b]) if the tiny
    # XLA gather ever shows up in profiles.
    idx_t = jnp.transpose(idx, (0, 2, 1)).reshape(B, k * N)
    xn = jax.vmap(lambda xb, ib: xb[ib])(x, idx_t).reshape(B, k, N, Fin)

    out = edge_linear_max(x, xn, wcd, wd, bp)            # Pallas kernel 2
    return out if Fp == Fout else out[..., :Fout]


# --------------------------------------------------------------------------
# Pure-JAX reference (mirrors the PyTorch forward exactly)
# --------------------------------------------------------------------------
def edge_conv_reference(x, w, b, k):
    B, N, F = x.shape
    xi = -2.0 * jnp.einsum("bnf,bmf->bnm", x, x)
    xs = jnp.sum(x ** 2, axis=2, keepdims=True)
    dist = xi + xs + jnp.transpose(xs, (0, 2, 1))
    idx = jnp.argsort(dist, axis=2)[:, :, 1:k + 1]
    nbr = jax.vmap(lambda xb, ib: xb[ib])(x, idx.reshape(B, N * k))
    nbr = nbr.reshape(B, N, k, F)
    central = jnp.broadcast_to(x[:, :, None, :], (B, N, k, F))
    ee = jnp.concatenate([central, nbr - central], axis=3)     # [B, N, k, 2F]
    y = jnp.einsum("bnkf,fo->bnko", ee, w) + b                 # Linear
    return jnp.max(y, axis=2)                                  # max over k


if __name__ == "__main__":
    B, N, Fin, Fout, k = 2, 16, 4, 32, 8

    key = jax.random.PRNGKey(0)
    kx, kw, kb = jax.random.split(key, 3)
    x = jax.random.normal(kx, (B, N, Fin), dtype=jnp.float32)
    # Deterministic Linear(2*Fin, Fout) params (y = ee @ W + b).
    bound = 1.0 / np.sqrt(2 * Fin)
    w = jax.random.uniform(kw, (2 * Fin, Fout), jnp.float32, -bound, bound)
    b = jax.random.uniform(kb, (Fout,), jnp.float32, -bound, bound)

    fwd = jax.jit(edge_conv_forward, static_argnames="k")
    out = jax.block_until_ready(fwd(x, w, b, k=k))

    ref = edge_conv_reference(x, w, b, k)
    np.testing.assert_allclose(np.asarray(out), np.asarray(ref),
                               rtol=1e-4, atol=1e-4)
    assert out.shape == (B, N, Fout)
    print("KERNEL_OK")
</pallas_src>

<mosaic_0001>
module attributes {stable_mosaic.version = 11 : i64} {
  func.func @_knn_topk_kernel(%arg0: i32, %arg1: i32, %arg2: i32, %arg3: memref<1x16x4xf32, #tpu.memory_space<vmem>>, %arg4: memref<1x16x4xf32, #tpu.memory_space<vmem>>, %arg5: memref<1x1x16xf32, #tpu.memory_space<vmem>>, %arg6: memref<1x16x8xi32, #tpu.memory_space<vmem>>, %arg7: memref<16x8xf32, #tpu.memory_space<vmem>>, %arg8: memref<16x8xf32, #tpu.memory_space<vmem>>) attributes {dimension_semantics = [#tpu.dimension_semantics<parallel>, #tpu.dimension_semantics<parallel>, #tpu.dimension_semantics<arbitrary>], iteration_bounds = array<i64: 2, 1, 1>, scalar_prefetch = 0 : i64, scratch_operands = 2 : i64, tpu.core_type = #tpu.core_type<tc>, window_params = [{transform_indices = @transform_0, window_bounds = array<i64: 1, 16, 4>}, {transform_indices = @transform_1, window_bounds = array<i64: 1, 16, 4>}, {transform_indices = @transform_2, window_bounds = array<i64: 1, 1, 16>}, {transform_indices = @transform_3, window_bounds = array<i64: 1, 16, 8>}]} {
    %c0_i32 = arith.constant 0 : i32
    %0 = arith.cmpi eq, %arg2, %c0_i32 : i32
    %1 = arith.extui %0 : i1 to i32
    %c0_i32_0 = arith.constant 0 : i32
    %2 = arith.cmpi ne, %1, %c0_i32_0 : i32
    scf.if %2 {
      %cst_54 = arith.constant 0x7F800000 : f32
      %139 = vector.broadcast %cst_54 : f32 to vector<16x8xf32>
      %c0_55 = arith.constant 0 : index
      %c0_56 = arith.constant 0 : index
      %140 = vector.load %arg7[%c0_55, %c0_56] : memref<16x8xf32, #tpu.memory_space<vmem>>, vector<16x8xf32>
      tpu.vector_store %arg7[%c0_55, %c0_56], %139 {strides = array<i32>} : memref<16x8xf32, #tpu.memory_space<vmem>>, vector<16x8xf32>,
      %cst_57 = arith.constant 0.000000e+00 : f32
      %141 = vector.broadcast %cst_57 : f32 to vector<16x8xf32>
      %c0_58 = arith.constant 0 : index
      %c0_59 = arith.constant 0 : index
      %142 = vector.load %arg8[%c0_58, %c0_59] : memref<16x8xf32, #tpu.memory_space<vmem>>, vector<16x8xf32>
      tpu.vector_store %arg8[%c0_58, %c0_59], %141 {strides = array<i32>} : memref<16x8xf32, #tpu.memory_space<vmem>>, vector<16x8xf32>,
    } else {
    }
    %c0 = arith.constant 0 : index
    %c0_1 = arith.constant 0 : index
    %c0_2 = arith.constant 0 : index
    %3 = vector.load %arg3[%c0, %c0_1, %c0_2] : memref<1x16x4xf32, #tpu.memory_space<vmem>>, vector<1x16x4xf32>
    %4 = vector.shape_cast %3 : vector<1x16x4xf32> to vector<16x4xf32>
    %c0_3 = arith.constant 0 : index
    %c0_4 = arith.constant 0 : index
    %c0_5 = arith.constant 0 : index
    %5 = vector.load %arg4[%c0_3, %c0_4, %c0_5] : memref<1x16x4xf32, #tpu.memory_space<vmem>>, vector<1x16x4xf32>
    %6 = vector.shape_cast %5 : vector<1x16x4xf32> to vector<16x4xf32>
    %cst = arith.constant dense<0.000000e+00> : vector<16x16xf32>
    %7 = tpu.matmul %4, %6, %cst {dimension_numbers = #tpu.dot_dimension_numbers<[1], [1], [0], [0], [0, 0, 1, 0], [], []>} : vector<16x4xf32>, vector<16x4xf32>, vector<16x16xf32> -> vector<16x16xf32>
    %cst_6 = arith.constant -2.000000e+00 : f32
    %8 = vector.broadcast %cst_6 : f32 to vector<16x16xf32>
    %9 = arith.mulf %8, %7 : vector<16x16xf32>
    %c0_7 = arith.constant 0 : index
    %c0_8 = arith.constant 0 : index
    %c0_9 = arith.constant 0 : index
    %10 = vector.load %arg5[%c0_7, %c0_8, %c0_9] : memref<1x1x16xf32, #tpu.memory_space<vmem>>, vector<1x1x16xf32>
    %11 = vector.shape_cast %10 : vector<1x1x16xf32> to vector<1x16xf32>
    %12 = vector.broadcast %11 : vector<1x16xf32> to vector<16x16xf32>
    %13 = arith.addf %9, %12 : vector<16x16xf32>
    %14 = tpu.iota {dimensions = array<i32: 0>} : vector<16x16xi32>
    %c16_i32 = arith.constant 16 : i32
    %15 = arith.muli %arg1, %c16_i32 : i32
    %16 = vector.broadcast %15 : i32 to vector<16x16xi32>
    %17 = arith.addi %14, %16 : vector<16x16xi32>
    %18 = tpu.iota {dimensions = array<i32: 1>} : vector<16x16xi32>
    %c16_i32_10 = arith.constant 16 : i32
    %19 = arith.muli %arg2, %c16_i32_10 : i32
    %20 = vector.broadcast %19 : i32 to vector<16x16xi32>
    %21 = arith.addi %18, %20 : vector<16x16xi32>
    %22 = arith.cmpi eq, %17, %21 : vector<16x16xi32>
    %c16_i32_11 = arith.constant 16 : i32
    %23 = vector.broadcast %c16_i32_11 : i32 to vector<16x16xi32>
    %24 = arith.cmpi sge, %21, %23 : vector<16x16xi32>
    %25 = arith.ori %22, %24 : vector<16x16xi1>
    %cst_12 = arith.constant 0x7F800000 : f32
    %26 = vector.broadcast %cst_12 : f32 to vector<16x16xf32>
    %27 = arith.select %25, %26, %13 : vector<16x16xi1>, vector<16x16xf32>
    %c0_13 = arith.constant 0 : index
    %c0_14 = arith.constant 0 : index
    %28 = vector.load %arg7[%c0_13, %c0_14] : memref<16x8xf32, #tpu.memory_space<vmem>>, vector<16x8xf32>
    %29 = tpu.concatenate %27, %28 in 1 : vector<16x16xf32>, vector<16x8xf32> -> vector<16x24xf32>
    %30 = arith.sitofp %21 : vector<16x16xi32> to vector<16x16xf32>
    %c0_15 = arith.constant 0 : index
    %c0_16 = arith.constant 0 : index
    %31 = vector.load %arg8[%c0_15, %c0_16] : memref<16x8xf32, #tpu.memory_space<vmem>>, vector<16x8xf32>
    %32 = tpu.concatenate %30, %31 in 1 : vector<16x16xf32>, vector<16x8xf32> -> vector<16x24xf32>
    %cst_17 = arith.constant dense<0x7F800000> : vector<16xf32>
    %33 = vector.multi_reduction <minimumf>, %29, %cst_17 [1] : vector<16x24xf32> to vector<16xf32>
    %34 = vector.shape_cast %33 : vector<16xf32> to vector<16x1xf32>
    %35 = vector.broadcast %34 : vector<16x1xf32> to vector<16x24xf32>
    %36 = arith.cmpf oeq, %29, %35 : vector<16x24xf32>
    %cst_18 = arith.constant 0x7F800000 : f32
    %37 = vector.broadcast %cst_18 : f32 to vector<16x24xf32>
    %38 = arith.select %36, %32, %37 : vector<16x24xi1>, vector<16x24xf32>
    %cst_19 = arith.constant dense<0x7F800000> : vector<16xf32>
    %39 = vector.multi_reduction <minimumf>, %38, %cst_19 [1] : vector<16x24xf32> to vector<16xf32>
    %40 = vector.shape_cast %39 : vector<16xf32> to vector<16x1xf32>
    %41 = vector.broadcast %40 : vector<16x1xf32> to vector<16x24xf32>
    %42 = arith.cmpf oeq, %32, %41 : vector<16x24xf32>
    %43 = arith.andi %36, %42 : vector<16x24xi1>
    %cst_20 = arith.constant 0x7F800000 : f32
    %44 = vector.broadcast %cst_20 : f32 to vector<16x24xf32>
    %45 = arith.select %43, %44, %29 : vector<16x24xi1>, vector<16x24xf32>
    %cst_21 = arith.constant dense<0x7F800000> : vector<16xf32>
    %46 = vector.multi_reduction <minimumf>, %45, %cst_21 [1] : vector<16x24xf32> to vector<16xf32>
    %47 = vector.shape_cast %46 : vector<16xf32> to vector<16x1xf32>
    %48 = vector.broadcast %47 : vector<16x1xf32> to vector<16x24xf32>
    %49 = arith.cmpf oeq, %45, %48 : vector<16x24xf32>
    %cst_22 = arith.constant 0x7F800000 : f32
    %50 = vector.broadcast %cst_22 : f32 to vector<16x24xf32>
    %51 = arith.select %49, %32, %50 : vector<16x24xi1>, vector<16x24xf32>
    %cst_23 = arith.constant dense<0x7F800000> : vector<16xf32>
    %52 = vector.multi_reduction <minimumf>, %51, %cst_23 [1] : vector<16x24xf32> to vector<16xf32>
    %53 = vector.shape_cast %52 : vector<16xf32> to vector<16x1xf32>
    %54 = vector.broadcast %53 : vector<16x1xf32> to vector<16x24xf32>
    %55 = arith.cmpf oeq, %32, %54 : vector<16x24xf32>
    %56 = arith.andi %49, %55 : vector<16x24xi1>
    %cst_24 = arith.constant 0x7F800000 : f32
    %57 = vector.broadcast %cst_24 : f32 to vector<16x24xf32>
    %58 = arith.select %56, %57, %45 : vector<16x24xi1>, vector<16x24xf32>
    %cst_25 = arith.constant dense<0x7F800000> : vector<16xf32>
    %59 = vector.multi_reduction <minimumf>, %58, %cst_25 [1] : vector<16x24xf32> to vector<16xf32>
    %60 = vector.shape_cast %59 : vector<16xf32> to vector<16x1xf32>
    %61 = vector.broadcast %60 : vector<16x1xf32> to vector<16x24xf32>
    %62 = arith.cmpf oeq, %58, %61 : vector<16x24xf32>
    %cst_26 = arith.constant 0x7F800000 : f32
    %63 = vector.broadcast %cst_26 : f32 to vector<16x24xf32>
    %64 = arith.select %62, %32, %63 : vector<16x24xi1>, vector<16x24xf32>
    %cst_27 = arith.constant dense<0x7F800000> : vector<16xf32>
    %65 = vector.multi_reduction <minimumf>, %64, %cst_27 [1] : vector<16x24xf32> to vector<16xf32>
    %66 = vector.shape_cast %65 : vector<16xf32> to vector<16x1xf32>
    %67 = vector.broadcast %66 : vector<16x1xf32> to vector<16x24xf32>
    %68 = arith.cmpf oeq, %32, %67 : vector<16x24xf32>
    %69 = arith.andi %62, %68 : vector<16x24xi1>
    %cst_28 = arith.constant 0x7F800000 : f32
    %70 = vector.broadcast %cst_28 : f32 to vector<16x24xf32>
    %71 = arith.select %69, %70, %58 : vector<16x24xi1>, vector<16x24xf32>
    %cst_29 = arith.constant dense<0x7F800000> : vector<16xf32>
    %72 = vector.multi_reduction <minimumf>, %71, %cst_29 [1] : vector<16x24xf32> to vector<16xf32>
    %73 = vector.shape_cast %72 : vector<16xf32> to vector<16x1xf32>
    %74 = vector.broadcast %73 : vector<16x1xf32> to vector<16x24xf32>
    %75 = arith.cmpf oeq, %71, %74 : vector<16x24xf32>
    %cst_30 = arith.constant 0x7F800000 : f32
    %76 = vector.broadcast %cst_30 : f32 to vector<16x24xf32>
    %77 = arith.select %75, %32, %76 : vector<16x24xi1>, vector<16x24xf32>
    %cst_31 = arith.constant dense<0x7F800000> : vector<16xf32>
    %78 = vector.multi_reduction <minimumf>, %77, %cst_31 [1] : vector<16x24xf32> to vector<16xf32>
    %79 = vector.shape_cast %78 : vector<16xf32> to vector<16x1xf32>
    %80 = vector.broadcast %79 : vector<16x1xf32> to vector<16x24xf32>
    %81 = arith.cmpf oeq, %32, %80 : vector<16x24xf32>
    %82 = arith.andi %75, %81 : vector<16x24xi1>
    %cst_32 = arith.constant 0x7F800000 : f32
    %83 = vector.broadcast %cst_32 : f32 to vector<16x24xf32>
    %84 = arith.select %82, %83, %71 : vector<16x24xi1>, vector<16x24xf32>
    %cst_33 = arith.constant dense<0x7F800000> : vector<16xf32>
    %85 = vector.multi_reduction <minimumf>, %84, %cst_33 [1] : vector<16x24xf32> to vector<16xf32>
    %86 = vector.shape_cast %85 : vector<16xf32> to vector<16x1xf32>
    %87 = vector.broadcast %86 : vector<16x1xf32> to vector<16x24xf32>
    %88 = arith.cmpf oeq, %84, %87 : vector<16x24xf32>
    %cst_34 = arith.constant 0x7F800000 : f32
    %89 = vector.broadcast %cst_34 : f32 to vector<16x24xf32>
    %90 = arith.select %88, %32, %89 : vector<16x24xi1>, vector<16x24xf32>
    %cst_35 = arith.constant dense<0x7F800000> : vector<16xf32>
    %91 = vector.multi_reduction <minimumf>, %90, %cst_35 [1] : vector<16x24xf32> to vector<16xf32>
    %92 = vector.shape_cast %91 : vector<16xf32> to vector<16x1xf32>
    %93 = vector.broadcast %92 : vector<16x1xf32> to vector<16x24xf32>
    %94 = arith.cmpf oeq, %32, %93 : vector<16x24xf32>
    %95 = arith.andi %88, %94 : vector<16x24xi1>
    %cst_36 = arith.constant 0x7F800000 : f32
    %96 = vector.broadcast %cst_36 : f32 to vector<16x24xf32>
    %97 = arith.select %95, %96, %84 : vector<16x24xi1>, vector<16x24xf32>
    %cst_37 = arith.constant dense<0x7F800000> : vector<16xf32>
    %98 = vector.multi_reduction <minimumf>, %97, %cst_37 [1] : vector<16x24xf32> to vector<16xf32>
    %99 = vector.shape_cast %98 : vector<16xf32> to vector<16x1xf32>
    %100 = vector.broadcast %99 : vector<16x1xf32> to vector<16x24xf32>
    %101 = arith.cmpf oeq, %97, %100 : vector<16x24xf32>
    %cst_38 = arith.constant 0x7F800000 : f32
    %102 = vector.broadcast %cst_38 : f32 to vector<16x24xf32>
    %103 = arith.select %101, %32, %102 : vector<16x24xi1>, vector<16x24xf32>
    %cst_39 = arith.constant dense<0x7F800000> : vector<16xf32>
    %104 = vector.multi_reduction <minimumf>, %103, %cst_39 [1] : vector<16x24xf32> to vector<16xf32>
    %105 = vector.shape_cast %104 : vector<16xf32> to vector<16x1xf32>
    %106 = vector.broadcast %105 : vector<16x1xf32> to vector<16x24xf32>
    %107 = arith.cmpf oeq, %32, %106 : vector<16x24xf32>
    %108 = arith.andi %101, %107 : vector<16x24xi1>
    %cst_40 = arith.constant 0x7F800000 : f32
    %109 = vector.broadcast %cst_40 : f32 to vector<16x24xf32>
    %110 = arith.select %108, %109, %97 : vector<16x24xi1>, vector<16x24xf32>
    %cst_41 = arith.constant dense<0x7F800000> : vector<16xf32>
    %111 = vector.multi_reduction <minimumf>, %110, %cst_41 [1] : vector<16x24xf32> to vector<16xf32>
    %112 = vector.shape_cast %111 : vector<16xf32> to vector<16x1xf32>
    %113 = vector.broadcast %112 : vector<16x1xf32> to vector<16x24xf32>
    %114 = arith.cmpf oeq, %110, %113 : vector<16x24xf32>
    %cst_42 = arith.constant 0x7F800000 : f32
    %115 = vector.broadcast %cst_42 : f32 to vector<16x24xf32>
    %116 = arith.select %114, %32, %115 : vector<16x24xi1>, vector<16x24xf32>
    %cst_43 = arith.constant dense<0x7F800000> : vector<16xf32>
    %117 = vector.multi_reduction <minimumf>, %116, %cst_43 [1] : vector<16x24xf32> to vector<16xf32>
    %118 = vector.shape_cast %117 : vector<16xf32> to vector<16x1xf32>
    %119 = vector.broadcast %118 : vector<16x1xf32> to vector<16x24xf32>
    %120 = arith.cmpf oeq, %32, %119 : vector<16x24xf32>
    %121 = arith.andi %114, %120 : vector<16x24xi1>
    %cst_44 = arith.constant 0x7F800000 : f32
    %122 = vector.broadcast %cst_44 : f32 to vector<16x24xf32>
    %123 = arith.select %121, %122, %110 : vector<16x24xi1>, vector<16x24xf32>
    %cst_45 = arith.constant dense<0x7F800000> : vector<16xf32>
    %124 = vector.multi_reduction <minimumf>, %123, %cst_45 [1] : vector<16x24xf32> to vector<16xf32>
    %125 = vector.shape_cast %124 : vector<16xf32> to vector<16x1xf32>
    %126 = vector.broadcast %125 : vector<16x1xf32> to vector<16x24xf32>
    %127 = arith.cmpf oeq, %123, %126 : vector<16x24xf32>
    %cst_46 = arith.constant 0x7F800000 : f32
    %128 = vector.broadcast %cst_46 : f32 to vector<16x24xf32>
    %129 = arith.select %127, %32, %128 : vector<16x24xi1>, vector<16x24xf32>
    %cst_47 = arith.constant dense<0x7F800000> : vector<16xf32>
    %130 = vector.multi_reduction <minimumf>, %129, %cst_47 [1] : vector<16x24xf32> to vector<16xf32>
    %131 = vector.shape_cast %130 : vector<16xf32> to vector<16x1xf32>
    %132 = tpu.concatenate %34, %47, %60, %73, %86, %99, %112, %125 in 1 : vector<16x1xf32>, vector<16x1xf32>, vector<16x1xf32>, vector<16x1xf32>, vector<16x1xf32>, vector<16x1xf32>, vector<16x1xf32>, vector<16x1xf32> -> vector<16x8xf32>
    %c0_48 = arith.constant 0 : index
    %c0_49 = arith.constant 0 : index
    %133 = vector.load %arg7[%c0_48, %c0_49] : memref<16x8xf32, #tpu.memory_space<vmem>>, vector<16x8xf32>
    tpu.vector_store %arg7[%c0_48, %c0_49], %132 {strides = array<i32>} : memref<16x8xf32, #tpu.memory_space<vmem>>, vector<16x8xf32>,
    %134 = tpu.concatenate %40, %53, %66, %79, %92, %105, %118, %131 in 1 : vector<16x1xf32>, vector<16x1xf32>, vector<16x1xf32>, vector<16x1xf32>, vector<16x1xf32>, vector<16x1xf32>, vector<16x1xf32>, vector<16x1xf32> -> vector<16x8xf32>
    %c0_50 = arith.constant 0 : index
    %c0_51 = arith.constant 0 : index
    %135 = vector.load %arg8[%c0_50, %c0_51] : memref<16x8xf32, #tpu.memory_space<vmem>>, vector<16x8xf32>
    tpu.vector_store %arg8[%c0_50, %c0_51], %134 {strides = array<i32>} : memref<16x8xf32, #tpu.memory_space<vmem>>, vector<16x8xf32>,
    %c0_i32_52 = arith.constant 0 : i32
    %136 = arith.cmpi eq, %arg2, %c0_i32_52 : i32
    %137 = arith.extui %136 : i1 to i32
    %c0_i32_53 = arith.constant 0 : i32
    %138 = arith.cmpi ne, %137, %c0_i32_53 : i32
    scf.if %138 {
      %c0_54 = arith.constant 0 : index
      %c0_55 = arith.constant 0 : index
      %139 = vector.load %arg8[%c0_54, %c0_55] : memref<16x8xf32, #tpu.memory_space<vmem>>, vector<16x8xf32>
      %140 = arith.fptosi %139 : vector<16x8xf32> to vector<16x8xi32>
      %c0_56 = arith.constant 0 : index
      %c0_57 = arith.constant 0 : index
      %c0_58 = arith.constant 0 : index
      %141 = vector.load %arg6[%c0_56, %c0_57, %c0_58] : memref<1x16x8xi32, #tpu.memory_space<vmem>>, vector<1x16x8xi32>
      %142 = vector.shape_cast %141 : vector<1x16x8xi32> to vector<16x8xi32>
      %143 = vector.shape_cast %140 : vector<16x8xi32> to vector<1x16x8xi32>
      tpu.vector_store %arg6[%c0_56, %c0_57, %c0_58], %143 {strides = array<i32>} : memref<1x16x8xi32, #tpu.memory_space<vmem>>, vector<1x16x8xi32>,
    } else {
    }
    return
  }
  func.func @transform_0(%arg0: i32, %arg1: i32, %arg2: i32) -> (i32, i32, i32) {
    %c0_i32 = arith.constant 0 : i32
    %c0_i32_0 = arith.constant 0 : i32
    return %arg0, %arg1, %c0_i32 : i32, i32, i32
  }
  func.func @transform_1(%arg0: i32, %arg1: i32, %arg2: i32) -> (i32, i32, i32) {
    %c0_i32 = arith.constant 0 : i32
    %c0_i32_0 = arith.constant 0 : i32
    return %arg0, %arg2, %c0_i32 : i32, i32, i32
  }
  func.func @transform_2(%arg0: i32, %arg1: i32, %arg2: i32) -> (i32, i32, i32) {
    %c0_i32 = arith.constant 0 : i32
    %c0_i32_0 = arith.constant 0 : i32
    return %arg0, %c0_i32, %arg2 : i32, i32, i32
  }
  func.func @transform_3(%arg0: i32, %arg1: i32, %arg2: i32) -> (i32, i32, i32) {
    %c0_i32 = arith.constant 0 : i32
    %c0_i32_0 = arith.constant 0 : i32
    return %arg0, %arg1, %c0_i32 : i32, i32, i32
  }
}

module attributes {stable_mosaic.version = 11 : i64} {
  func.func @_edge_linear_max_kernel(%arg0: i32, %arg1: i32, %arg2: memref<1x16x4xf32, #tpu.memory_space<vmem>>, %arg3: memref<1x8x16x4xf32, #tpu.memory_space<vmem>>, %arg4: memref<4x32xf32, #tpu.memory_space<vmem>>, %arg5: memref<4x32xf32, #tpu.memory_space<vmem>>, %arg6: memref<1x32xf32, #tpu.memory_space<vmem>>, %arg7: memref<1x16x32xf32, #tpu.memory_space<vmem>>) attributes {dimension_semantics = [#tpu.dimension_semantics<parallel>, #tpu.dimension_semantics<parallel>], iteration_bounds = array<i64: 2, 1>, scalar_prefetch = 0 : i64, scratch_operands = 0 : i64, tpu.core_type = #tpu.core_type<tc>, window_params = [{transform_indices = @transform_0, window_bounds = array<i64: 1, 16, 4>}, {transform_indices = @transform_1, window_bounds = array<i64: 1, 8, 16, 4>}, {pipeline_mode = #tpu.pipeline_mode<synchronous>, transform_indices = @transform_2, window_bounds = array<i64: 4, 32>}, {pipeline_mode = #tpu.pipeline_mode<synchronous>, transform_indices = @transform_3, window_bounds = array<i64: 4, 32>}, {pipeline_mode = #tpu.pipeline_mode<synchronous>, transform_indices = @transform_4, window_bounds = array<i64: 1, 32>}, {transform_indices = @transform_5, window_bounds = array<i64: 1, 16, 32>}]} {
    %c0 = arith.constant 0 : index
    %c0_0 = arith.constant 0 : index
    %c0_1 = arith.constant 0 : index
    %0 = vector.load %arg2[%c0, %c0_0, %c0_1] : memref<1x16x4xf32, #tpu.memory_space<vmem>>, vector<1x16x4xf32>
    %1 = vector.shape_cast %0 : vector<1x16x4xf32> to vector<16x4xf32>
    %c0_2 = arith.constant 0 : index
    %c0_3 = arith.constant 0 : index
    %2 = vector.load %arg4[%c0_2, %c0_3] : memref<4x32xf32, #tpu.memory_space<vmem>>, vector<4x32xf32>
    %c0_4 = arith.constant 0 : index
    %c0_5 = arith.constant 0 : index
    %3 = vector.load %arg5[%c0_4, %c0_5] : memref<4x32xf32, #tpu.memory_space<vmem>>, vector<4x32xf32>
    %cst = arith.constant dense<0.000000e+00> : vector<16x32xf32>
    %4 = tpu.matmul %1, %2, %cst {dimension_numbers = #tpu.dot_dimension_numbers<[1], [0], [0], [1], [0, 0, 1, 1], [], []>} : vector<16x4xf32>, vector<4x32xf32>, vector<16x32xf32> -> vector<16x32xf32>
    %c0_6 = arith.constant 0 : index
    %c0_7 = arith.constant 0 : index
    %5 = vector.load %arg6[%c0_6, %c0_7] : memref<1x32xf32, #tpu.memory_space<vmem>>, vector<1x32xf32>
    %6 = vector.broadcast %5 : vector<1x32xf32> to vector<16x32xf32>
    %7 = arith.addf %4, %6 : vector<16x32xf32>
    %c0_8 = arith.constant 0 : index
    %c0_9 = arith.constant 0 : index
    %c0_10 = arith.constant 0 : index
    %c0_11 = arith.constant 0 : index
    %8 = vector.load %arg3[%c0_8, %c0_9, %c0_10, %c0_11] : memref<1x8x16x4xf32, #tpu.memory_space<vmem>>, vector<1x1x16x4xf32>
    %9 = vector.shape_cast %8 : vector<1x1x16x4xf32> to vector<16x4xf32>
    %cst_12 = arith.constant dense<0.000000e+00> : vector<16x32xf32>
    %10 = tpu.matmul %9, %3, %cst_12 {dimension_numbers = #tpu.dot_dimension_numbers<[1], [0], [0], [1], [0, 0, 1, 1], [], []>} : vector<16x4xf32>, vector<4x32xf32>, vector<16x32xf32> -> vector<16x32xf32>
    %c0_13 = arith.constant 0 : index
    %c1 = arith.constant 1 : index
    %c0_14 = arith.constant 0 : index
    %c0_15 = arith.constant 0 : index
    %11 = vector.load %arg3[%c0_13, %c1, %c0_14, %c0_15] : memref<1x8x16x4xf32, #tpu.memory_space<vmem>>, vector<1x1x16x4xf32>
    %12 = vector.shape_cast %11 : vector<1x1x16x4xf32> to vector<16x4xf32>
    %cst_16 = arith.constant dense<0.000000e+00> : vector<16x32xf32>
    %13 = tpu.matmul %12, %3, %cst_16 {dimension_numbers = #tpu.dot_dimension_numbers<[1], [0], [0], [1], [0, 0, 1, 1], [], []>} : vector<16x4xf32>, vector<4x32xf32>, vector<16x32xf32> -> vector<16x32xf32>
    %14 = arith.maximumf %10, %13 : vector<16x32xf32>
    %c0_17 = arith.constant 0 : index
    %c2 = arith.constant 2 : index
    %c0_18 = arith.constant 0 : index
    %c0_19 = arith.constant 0 : index
    %15 = vector.load %arg3[%c0_17, %c2, %c0_18, %c0_19] : memref<1x8x16x4xf32, #tpu.memory_space<vmem>>, vector<1x1x16x4xf32>
    %16 = vector.shape_cast %15 : vector<1x1x16x4xf32> to vector<16x4xf32>
    %cst_20 = arith.constant dense<0.000000e+00> : vector<16x32xf32>
    %17 = tpu.matmul %16, %3, %cst_20 {dimension_numbers = #tpu.dot_dimension_numbers<[1], [0], [0], [1], [0, 0, 1, 1], [], []>} : vector<16x4xf32>, vector<4x32xf32>, vector<16x32xf32> -> vector<16x32xf32>
    %18 = arith.maximumf %14, %17 : vector<16x32xf32>
    %c0_21 = arith.constant 0 : index
    %c3 = arith.constant 3 : index
    %c0_22 = arith.constant 0 : index
    %c0_23 = arith.constant 0 : index
    %19 = vector.load %arg3[%c0_21, %c3, %c0_22, %c0_23] : memref<1x8x16x4xf32, #tpu.memory_space<vmem>>, vector<1x1x16x4xf32>
    %20 = vector.shape_cast %19 : vector<1x1x16x4xf32> to vector<16x4xf32>
    %cst_24 = arith.constant dense<0.000000e+00> : vector<16x32xf32>
    %21 = tpu.matmul %20, %3, %cst_24 {dimension_numbers = #tpu.dot_dimension_numbers<[1], [0], [0], [1], [0, 0, 1, 1], [], []>} : vector<16x4xf32>, vector<4x32xf32>, vector<16x32xf32> -> vector<16x32xf32>
    %22 = arith.maximumf %18, %21 : vector<16x32xf32>
    %c0_25 = arith.constant 0 : index
    %c4 = arith.constant 4 : index
    %c0_26 = arith.constant 0 : index
    %c0_27 = arith.constant 0 : index
    %23 = vector.load %arg3[%c0_25, %c4, %c0_26, %c0_27] : memref<1x8x16x4xf32, #tpu.memory_space<vmem>>, vector<1x1x16x4xf32>
    %24 = vector.shape_cast %23 : vector<1x1x16x4xf32> to vector<16x4xf32>
    %cst_28 = arith.constant dense<0.000000e+00> : vector<16x32xf32>
    %25 = tpu.matmul %24, %3, %cst_28 {dimension_numbers = #tpu.dot_dimension_numbers<[1], [0], [0], [1], [0, 0, 1, 1], [], []>} : vector<16x4xf32>, vector<4x32xf32>, vector<16x32xf32> -> vector<16x32xf32>
    %26 = arith.maximumf %22, %25 : vector<16x32xf32>
    %c0_29 = arith.constant 0 : index
    %c5 = arith.constant 5 : index
    %c0_30 = arith.constant 0 : index
    %c0_31 = arith.constant 0 : index
    %27 = vector.load %arg3[%c0_29, %c5, %c0_30, %c0_31] : memref<1x8x16x4xf32, #tpu.memory_space<vmem>>, vector<1x1x16x4xf32>
    %28 = vector.shape_cast %27 : vector<1x1x16x4xf32> to vector<16x4xf32>
    %cst_32 = arith.constant dense<0.000000e+00> : vector<16x32xf32>
    %29 = tpu.matmul %28, %3, %cst_32 {dimension_numbers = #tpu.dot_dimension_numbers<[1], [0], [0], [1], [0, 0, 1, 1], [], []>} : vector<16x4xf32>, vector<4x32xf32>, vector<16x32xf32> -> vector<16x32xf32>
    %30 = arith.maximumf %26, %29 : vector<16x32xf32>
    %c0_33 = arith.constant 0 : index
    %c6 = arith.constant 6 : index
    %c0_34 = arith.constant 0 : index
    %c0_35 = arith.constant 0 : index
    %31 = vector.load %arg3[%c0_33, %c6, %c0_34, %c0_35] : memref<1x8x16x4xf32, #tpu.memory_space<vmem>>, vector<1x1x16x4xf32>
    %32 = vector.shape_cast %31 : vector<1x1x16x4xf32> to vector<16x4xf32>
    %cst_36 = arith.constant dense<0.000000e+00> : vector<16x32xf32>
    %33 = tpu.matmul %32, %3, %cst_36 {dimension_numbers = #tpu.dot_dimension_numbers<[1], [0], [0], [1], [0, 0, 1, 1], [], []>} : vector<16x4xf32>, vector<4x32xf32>, vector<16x32xf32> -> vector<16x32xf32>
    %34 = arith.maximumf %30, %33 : vector<16x32xf32>
    %c0_37 = arith.constant 0 : index
    %c7 = arith.constant 7 : index
    %c0_38 = arith.constant 0 : index
    %c0_39 = arith.constant 0 : index
    %35 = vector.load %arg3[%c0_37, %c7, %c0_38, %c0_39] : memref<1x8x16x4xf32, #tpu.memory_space<vmem>>, vector<1x1x16x4xf32>
    %36 = vector.shape_cast %35 : vector<1x1x16x4xf32> to vector<16x4xf32>
    %cst_40 = arith.constant dense<0.000000e+00> : vector<16x32xf32>
    %37 = tpu.matmul %36, %3, %cst_40 {dimension_numbers = #tpu.dot_dimension_numbers<[1], [0], [0], [1], [0, 0, 1, 1], [], []>} : vector<16x4xf32>, vector<4x32xf32>, vector<16x32xf32> -> vector<16x32xf32>
    %38 = arith.maximumf %34, %37 : vector<16x32xf32>
    %39 = arith.addf %7, %38 : vector<16x32xf32>
    %c0_41 = arith.constant 0 : index
    %c0_42 = arith.constant 0 : index
    %c0_43 = arith.constant 0 : index
    %40 = vector.load %arg7[%c0_41, %c0_42, %c0_43] : memref<1x16x32xf32, #tpu.memory_space<vmem>>, vector<1x16x32xf32>
    %41 = vector.shape_cast %40 : vector<1x16x32xf32> to vector<16x32xf32>
    %42 = vector.shape_cast %39 : vector<16x32xf32> to vector<1x16x32xf32>
    tpu.vector_store %arg7[%c0_41, %c0_42, %c0_43], %42 {strides = array<i32>} : memref<1x16x32xf32, #tpu.memory_space<vmem>>, vector<1x16x32xf32>,
    return
  }
  func.func @transform_0(%arg0: i32, %arg1: i32) -> (i32, i32, i32) {
    %c0_i32 = arith.constant 0 : i32
    %c0_i32_0 = arith.constant 0 : i32
    return %arg0, %arg1, %c0_i32 : i32, i32, i32
  }
  func.func @transform_1(%arg0: i32, %arg1: i32) -> (i32, i32, i32, i32) {
    %c0_i32 = arith.constant 0 : i32
    %c0_i32_0 = arith.constant 0 : i32
    %c0_i32_1 = arith.constant 0 : i32
    return %arg0, %c0_i32, %arg1, %c0_i32_0 : i32, i32, i32, i32
  }
  func.func @transform_2(%arg0: i32, %arg1: i32) -> (i32, i32) {
    %c0_i32 = arith.constant 0 : i32
    %c0_i32_0 = arith.constant 0 : i32
    %c0_i32_1 = arith.constant 0 : i32
    return %c0_i32, %c0_i32_0 : i32, i32
  }
  func.func @transform_3(%arg0: i32, %arg1: i32) -> (i32, i32) {
    %c0_i32 = arith.constant 0 : i32
    %c0_i32_0 = arith.constant 0 : i32
    %c0_i32_1 = arith.constant 0 : i32
    return %c0_i32, %c0_i32_0 : i32, i32
  }
  func.func @transform_4(%arg0: i32, %arg1: i32) -> (i32, i32) {
    %c0_i32 = arith.constant 0 : i32
    %c0_i32_0 = arith.constant 0 : i32
    %c0_i32_1 = arith.constant 0 : i32
    return %c0_i32, %c0_i32_0 : i32, i32
  }
  func.func @transform_5(%arg0: i32, %arg1: i32) -> (i32, i32, i32) {
    %c0_i32 = arith.constant 0 : i32
    %c0_i32_0 = arith.constant 0 : i32
    return %arg0, %arg1, %c0_i32 : i32, i32, i32
  }
}

</mosaic_0001>

<bundles_post_ra>
// kernel: edge_conv_forward.2
= control target key start
LH: loop header
LB: loop body
LE: loop exit
PB: predicated region body
PF: predicated region fallthrough
CT: control target
= control target key end

     0   :  { %s890_s12 = smov 0   ;;  %s892_s13 = smov 0   ;;  %s1142_s0 = inlined_call_operand.vmem [shape: f32[2,16,4], index: 0, kind: input, shape index: {}, may-alias: {0,1}]   ;;  %s1143_s1 = inlined_call_operand.vmem [shape: f32[2,16,4], index: 1, kind: input, shape index: {}, may-alias: {0,1}]   ;;  %s1144_s2 = inlined_call_operand.vmem [shape: f32[2,1,16], index: 2, kind: input, shape index: {}]   ;;  %s1145_s3 = inlined_call_operand.vmem [shape: s32[2,16,8], index: 3, kind: output, shape index: {}]  }
   0x1   :  { %s894_s14 = smov 0  }
   0x2 LB: > { %s32_s15 = sadd.s32 1, %s861_s13  ;;  %p778_p0 = scmp.ge.s32.totalorder %s865_s14, 1  ;;  %s865_s14 = sphi %s894_s14, %s13_s14   ;;  %s861_s13 = sphi %s892_s13, %s1147_s13   ;;  %s857_s12 = sphi %s890_s12, %s1146_s12  }
   0x3   : > { %p34_p1 = scmp.ge.s32.totalorder %s32_s15, 2  ;;  %p195_p2 = scmp.lt.s32.totalorder %s865_s14, 3 }
   0x5   : > { %s1149_s15 = smov (%p34_p1, %s32_s15), 0  ;;  %p196_p3 = pnand %p778_p0, %p195_p2 }
   0x6   : > { %p243_p4 = scmp.lt.s32.totalorder (!%p196_p3), %s857_s12, 1  ;;  %vm282_vm0 = vcmask (!%p196_p3), 64512   ;;  %v867_v0 = vmov (!%p196_p3), inf   ;;  %vm291_vm1 = vcmask (!%p196_p3), 31744   ;;  %s868_s23 = smov (!%p196_p3), 16   ;;  %v869_v8 = vmov (!%p196_p3), 0.0  }
   0x7   : > { %199 = sbr.rel (%p196_p3) target bundleno = 2593 (0xa21), region = 32  ;;  %283 = vst.msk [vmem:[#allocation2] sm:$0xff] (!%p196_p3), %vm282_vm0, %v867_v0  ;;  %284 = vst.msk [vmem:[#allocation2 + $0x8] sm:$0xff] (!%p196_p3), %vm282_vm0, %v867_v0  ;;  %v390_v10 = vlaneseq (!%p196_p3)  ;;  %vm419_vm8 = vcmask (!%p196_p3), 130048   ;;  %vm435_vm9 = vcmask (!%p196_p3), 195584  }
   0x8   : > { %vm807_vm2 = vmpackc.low (!%p196_p3), %vm291_vm1, %vm291_vm1  ;;  %285 = vst.msk [vmem:[#allocation3] sm:$0xff] (!%p196_p3), %vm282_vm0, %v869_v8 }
   0x9   : > { %286 = vst.msk [vmem:[#allocation3 + $0x8] sm:$0xff] (!%p196_p3), %vm282_vm0, %v869_v8  ;;  %v391_v11 = vshrl.u32 (!%p196_p3), %v390_v10, 7  ;;  %v398_v12 = vand.u32 (!%p196_p3), 127, %v390_v10 }
   0xb   : > { %v392_v13 = vadd.s32 (!%p196_p3), 8, %v391_v11  ;;  %vm404_vm3 = vcmp.ge.s32.totalorder (!%p196_p3), %v398_v12, 16  ;;  %vm402_vm5 = vcmp.eq.s32.totalorder (!%p196_p3), %v391_v11, %v398_v12  ;;  %v422_v30 = vcvt.s32.f32 (!%p196_p3), %v398_v12 }
   0xc   : > { %vm405_vm7 = vmor (!%p196_p3), %vm402_vm5, %vm404_vm3 }
   0xd   : > { %vm403_vm4 = vcmp.eq.s32.totalorder (!%p196_p3), %v392_v13, %v398_v12 }
   0xe   : > { %s1151_s12 = smov (!%p243_p4, %s857_s12), 1  ;;  %v409_v5 = vld [vmem:[#allocation2] sm:$0xff]  ;;  %v410_v6 = vld [vmem:[#allocation2 + $0x8] sm:$0xff]  ;;  %vm406_vm6 = vmor %vm403_vm4, %vm404_vm3 }
   0xf   : > { %s913_s16 = sshll.u32 %s1151_s12, 4  ;;  %413 = vrot.lane.b32.xlu0 %v409_v5, %s868_s23  ;;  %v423_v9 = vld [vmem:[#allocation3] sm:$0xff]  ;;  %s267_s26 = scalar_lea.vmem %s1144_s2, %s1151_s12 }
  0x10   : > { %s260_s19 = scalar_lea.vmem %s1143_s1, %s913_s16  ;;  %s250_s22 = scalar_lea.vmem %s1142_s0, %s913_s16  ;;  %v789_v16 = vld [vmem:[%s267_s26] ss:$0 sm:$0xff]  ;;  %v424_v29 = vld [vmem:[#allocation3 + $0x8] sm:$0xff] }
  0x11   : > { %v289_v1 = vld [vmem:[%s260_s19] sm:$0xff]  ;;  %v290_v2 = vld [vmem:[%s260_s19 + $0x8] sm:$0xff]  ;;  %s276_s29 = scalar_lea.vmem %s1145_s3, %s913_s16 }
  0x12   : > { %v806_v3 = vpack.c.bf16 %v290_v2, %v289_v1  ;;  %v287_v4 = vld [vmem:[%s250_s22] sm:$0xff]  ;;  %v288_v7 = vld [vmem:[%s250_s22 + $0x8] sm:$0xff] }
  0x13   : > { %803 = vmatprep.mubr.msk.f32.mxu0 %vm291_vm1, %v287_v4  ;;  %415 = vrot.lane.b32.xlu0 %v410_v6, %s868_s23 }
  0x14   : > { %808 = vmatprep.subr.msk.bf16.mxu0 %vm807_vm2, %v806_v3 }
  0x15   : > { %811 = vmatpush3.bf16.xpose.msk.msra.mxu0 %vm807_vm2, %v806_v3 }
  0x17   : > { %427 = vrot.lane.b32.xlu0 %v423_v9, %s868_s23 }
  0x1c   : > { %804 = vmatmul.mubr.msk.f32.vlgmr.msra.gmra.mrb[0].mxu0 %vm291_vm1, %v288_v7 }
  0x81   : > { %v414_v14 = vpop.permute.xlu0 %413 }
  0x85   : > { %v416_v21 = vpop.permute.xlu0 %415 }
  0x89   : > { %v428_v32 = vpop.permute.xlu0 %427 }
  0x8a   : > { %v944_v33 = vsel %vm419_vm8, %v422_v30, %v428_v32 }
  0xef   : > { %v805_v15 = vpop.f32.mrb[0].mxu0 }
  0xf0   : > { %v380_v17 = vmul.f32 -2.0, %v805_v15  ;;  %v370_v18 = vpop.f32.mrb[1].mxu0 }
  0xf1   : > { %v379_v19 = vmul.f32 -2.0, %v370_v18 }
  0xf2   : > { %v389_v20 = vadd.f32 %v789_v16, %v380_v17 }
  0xf3   : > { %v388_v22 = vadd.f32 %v789_v16, %v379_v19 }
  0xf4   : > { %v408_v23 = vsel %vm406_vm6, inf, %v389_v20 }
  0xf5   : > { %v407_v24 = vsel %vm405_vm7, inf, %v388_v22  ;;  %v421_v25 = vsel %vm419_vm8, %v408_v23, %v416_v21 }
  0xf6   : > { %v439_v26 = vsel %vm435_vm9, %v421_v25, inf  ;;  %v420_v27 = vsel %vm419_vm8, %v407_v24, %v414_v14 }
  0xf7   : > { %440 = vmin.xlane.f32.xlu1 %v439_v26  ;;  %v436_v28 = vsel %vm435_vm9, %v420_v27, inf }
  0xfb   : > { %437 = vmin.xlane.f32.xlu1 %v436_v28 }
 0x10c   : > { %429 = vrot.lane.b32.xlu1 %v424_v29, %s868_s23 }
 0x184   : > { %v941_v31 = vpop.xlane.xlu1 %440 }
 0x185   : > { %vm443_vm11 = vcmp.eq.f32.partialorder %v421_v25, %v941_v31 }
 0x188   : > { %v946_v34 = vpop.xlane.xlu1 %437 }
 0x189   : > { %vm442_vm10 = vcmp.eq.f32.partialorder %v420_v27, %v946_v34 }
 0x18a   : > { %v444_v35 = vsel %vm442_vm10, %v944_v33, inf }
 0x18b   : > { %v446_v36 = vsel %vm435_vm9, %v444_v35, inf }
 0x18c   : > { %447 = vmin.xlane.f32.xlu0 %v446_v36  ;;  %v430_v37 = vpop.permute.xlu1 %429 }
 0x18d   : > { %v953_v38 = vsel %vm419_vm8, %v422_v30, %v430_v37 }
 0x18e   : > { %v445_v39 = vsel %vm443_vm11, %v953_v38, inf }
 0x18f   : > { %v449_v40 = vsel %vm435_vm9, %v445_v39, inf }
 0x190   : > { %450 = vmin.xlane.f32.xlu1 %v449_v40 }
 0x219   : > { %v957_v41 = vpop.xlane.xlu0 %447 }
 0x21a   : > { %vm452_vm12 = vcmp.eq.f32.partialorder %v944_v33, %v957_v41 }
 0x21b   : > { %vm454_vm13 = vmand %vm442_vm10, %vm452_vm12 }
 0x21c   : > { %v456_v42 = vsel %vm454_vm13, inf, %v420_v27 }
 0x21d   : > { %v961_v43 = vpop.xlane.xlu1 %450  ;;  %v458_v44 = vsel %vm435_vm9, %v456_v42, inf }
 0x21e   : > { %vm453_vm14 = vcmp.eq.f32.partialorder %v953_v38, %v961_v43  ;;  %459 = vmin.xlane.f32.xlu0 %v458_v44 }
 0x21f   : > { %vm455_vm15 = vmand %vm443_vm11, %vm453_vm14 }
 0x220   : > { %v457_v45 = vsel %vm455_vm15, inf, %v421_v25 }
 0x221   : > { %v461_v46 = vsel %vm435_vm9, %v457_v45, inf }
 0x222   : > { %462 = vmin.xlane.f32.xlu0 %v461_v46 }
 0x2ab   : > { %v967_v47 = vpop.xlane.xlu0 %459 }
 0x2ac   : > { %vm464_vm2 = vcmp.eq.f32.partialorder %v456_v42, %v967_v47 }
 0x2ad   : > { %v466_v48 = vsel %vm464_vm2, %v944_v33, inf }
 0x2ae   : > { %v468_v49 = vsel %vm435_vm9, %v466_v48, inf }
 0x2af   : > { %469 = vmin.xlane.f32.xlu0 %v468_v49  ;;  %v972_v50 = vpop.xlane.xlu0 %462 }
 0x2b0   : > { %vm465_vm3 = vcmp.eq.f32.partialorder %v457_v45, %v972_v50 }
 0x2b1   : > { %v467_v51 = vsel %vm465_vm3, %v953_v38, inf }
 0x2b2   : > { %v471_v52 = vsel %vm435_vm9, %v467_v51, inf }
 0x2b3   : > { %472 = vmin.xlane.f32.xlu0 %v471_v52 }
 0x33c   : > { %v977_v53 = vpop.xlane.xlu0 %469 }
 0x33d   : > { %vm474_vm4 = vcmp.eq.f32.partialorder %v944_v33, %v977_v53 }
 0x33e   : > { %vm476_vm5 = vmand %vm464_vm2, %vm474_vm4 }
 0x33f   : > { %v478_v54 = vsel %vm476_vm5, inf, %v456_v42 }
 0x340   : > { %v981_v55 = vpop.xlane.xlu0 %472  ;;  %v480_v56 = vsel %vm435_vm9, %v478_v54, inf }
 0x341   : > { %vm475_vm6 = vcmp.eq.f32.partialorder %v953_v38, %v981_v55  ;;  %481 = vmin.xlane.f32.xlu0 %v480_v56 }
 0x342   : > { %vm477_vm7 = vmand %vm465_vm3, %vm475_vm6 }
 0x343   : > { %v479_v57 = vsel %vm477_vm7, inf, %v457_v45 }
 0x344   : > { %v483_v58 = vsel %vm435_vm9, %v479_v57, inf }
 0x345   : > { %484 = vmin.xlane.f32.xlu1 %v483_v58 }
 0x3ce   : > { %v987_v59 = vpop.xlane.xlu0 %481 }
 0x3cf   : > { %vm486_vm8 = vcmp.eq.f32.partialorder %v478_v54, %v987_v59 }
 0x3d0   : > { %v488_v60 = vsel %vm486_vm8, %v944_v33, inf }
 0x3d1   : > { %v490_v61 = vsel %vm435_vm9, %v488_v60, inf }
 0x3d2   : > { %v992_v62 = vpop.xlane.xlu1 %484  ;;  %491 = vmin.xlane.f32.xlu0 %v490_v61 }
 0x3d3   : > { %vm487_vm10 = vcmp.eq.f32.partialorder %v479_v57, %v992_v62 }
 0x3d4   : > { %v489_v63 = vsel %vm487_vm10, %v953_v38, inf }
 0x3d5   : > { %v493_v0 = vsel %vm435_vm9, %v489_v63, inf }
 0x3d6   : > { %494 = vmin.xlane.f32.xlu1 %v493_v0 }
 0x45f   : > { %v997_v1 = vpop.xlane.xlu0 %491 }
 0x460   : > { %vm496_vm11 = vcmp.eq.f32.partialorder %v944_v33, %v997_v1 }
 0x461   : > { %vm498_vm12 = vmand %vm486_vm8, %vm496_vm11 }
 0x462   : > { %v500_v2 = vsel %vm498_vm12, inf, %v478_v54 }
 0x463   : > { %v1001_v3 = vpop.xlane.xlu1 %494  ;;  %v502_v4 = vsel %vm435_vm9, %v500_v2, inf }
 0x464   : > { %vm497_vm13 = vcmp.eq.f32.partialorder %v953_v38, %v1001_v3  ;;  %503 = vmin.xlane.f32.xlu0 %v502_v4 }
 0x465   : > { %vm499_vm14 = vmand %vm487_vm10, %vm497_vm13 }
 0x466   : > { %v501_v5 = vsel %vm499_vm14, inf, %v479_v57 }
 0x467   : > { %v505_v6 = vsel %vm435_vm9, %v501_v5, inf }
 0x468   : > { %506 = vmin.xlane.f32.xlu1 %v505_v6 }
 0x4f1   : > { %v1007_v7 = vpop.xlane.xlu0 %503 }
 0x4f2   : > { %vm508_vm15 = vcmp.eq.f32.partialorder %v500_v2, %v1007_v7 }
 0x4f3   : > { %v510_v8 = vsel %vm508_vm15, %v944_v33, inf }
 0x4f4   : > { %v512_v9 = vsel %vm435_vm9, %v510_v8, inf }
 0x4f5   : > { %v1012_v10 = vpop.xlane.xlu1 %506  ;;  %513 = vmin.xlane.f32.xlu0 %v512_v9 }
 0x4f6   : > { %vm509_vm2 = vcmp.eq.f32.partialorder %v501_v5, %v1012_v10 }
 0x4f7   : > { %v511_v11 = vsel %vm509_vm2, %v953_v38, inf }
 0x4f8   : > { %v515_v12 = vsel %vm435_vm9, %v511_v11, inf }
 0x4f9   : > { %516 = vmin.xlane.f32.xlu1 %v515_v12 }
 0x582   : > { %v1017_v13 = vpop.xlane.xlu0 %513 }
 0x583   : > { %vm518_vm3 = vcmp.eq.f32.partialorder %v944_v33, %v1017_v13 }
 0x584   : > { %vm520_vm4 = vmand %vm508_vm15, %vm518_vm3 }
 0x585   : > { %v522_v14 = vsel %vm520_vm4, inf, %v500_v2 }
 0x586   : > { %v1021_v15 = vpop.xlane.xlu1 %516  ;;  %v524_v16 = vsel %vm435_vm9, %v522_v14, inf }
 0x587   : > { %vm519_vm5 = vcmp.eq.f32.partialorder %v953_v38, %v1021_v15  ;;  %525 = vmin.xlane.f32.xlu0 %v524_v16 }
 0x588   : > { %vm521_vm6 = vmand %vm509_vm2, %vm519_vm5 }
 0x589   : > { %v523_v17 = vsel %vm521_vm6, inf, %v501_v5 }
 0x58a   : > { %v527_v18 = vsel %vm435_vm9, %v523_v17, inf }
 0x58b   : > { %528 = vmin.xlane.f32.xlu1 %v527_v18 }
 0x614   : > { %v1027_v19 = vpop.xlane.xlu0 %525 }
 0x615   : > { %vm530_vm7 = vcmp.eq.f32.partialorder %v522_v14, %v1027_v19 }
 0x616   : > { %v532_v20 = vsel %vm530_vm7, %v944_v33, inf }
 0x617   : > { %v534_v21 = vsel %vm435_vm9, %v532_v20, inf }
 0x618   : > { %v1032_v22 = vpop.xlane.xlu1 %528  ;;  %535 = vmin.xlane.f32.xlu0 %v534_v21 }
 0x619   : > { %vm531_vm8 = vcmp.eq.f32.partialorder %v523_v17, %v1032_v22 }
 0x61a   : > { %v533_v23 = vsel %vm531_vm8, %v953_v38, inf }
 0x61b   : > { %v537_v24 = vsel %vm435_vm9, %v533_v23, inf }
 0x61c   : > { %538 = vmin.xlane.f32.xlu1 %v537_v24 }
 0x6a5   : > { %v1037_v25 = vpop.xlane.xlu0 %535 }
 0x6a6   : > { %vm540_vm10 = vcmp.eq.f32.partialorder %v944_v33, %v1037_v25 }
 0x6a7   : > { %vm542_vm11 = vmand %vm530_vm7, %vm540_vm10 }
 0x6a8   : > { %v544_v26 = vsel %vm542_vm11, inf, %v522_v14 }
 0x6a9   : > { %v1041_v27 = vpop.xlane.xlu1 %538  ;;  %v546_v28 = vsel %vm435_vm9, %v544_v26, inf }
 0x6aa   : > { %vm541_vm12 = vcmp.eq.f32.partialorder %v953_v38, %v1041_v27  ;;  %547 = vmin.xlane.f32.xlu0 %v546_v28 }
 0x6ab   : > { %vm543_vm13 = vmand %vm531_vm8, %vm541_vm12 }
 0x6ac   : > { %v545_v29 = vsel %vm543_vm13, inf, %v523_v17  ;;  %vm606_vm13 = vcmask 7168  }
 0x6ad   : > { %v549_v30 = vsel %vm435_vm9, %v545_v29, inf  ;;  %v607_v5 = vsel %vm606_vm13, %v946_v34, %v967_v47  ;;  %v608_v11 = vsel %vm606_vm13, %v941_v31, %v972_v50 }
 0x6ae   : > { %550 = vmin.xlane.f32.xlu1 %v549_v30 }
 0x737   : > { %v548_v32 = vpop.xlane.xlu0 %547 }
 0x738   : > { %vm552_vm14 = vcmp.eq.f32.partialorder %v544_v26, %v548_v32 }
 0x739   : > { %v554_v35 = vsel %vm552_vm14, %v944_v33, inf }
 0x73a   : > { %v556_v36 = vsel %vm435_vm9, %v554_v35, inf }
 0x73b   : > { %v551_v37 = vpop.xlane.xlu1 %550  ;;  %557 = vmin.xlane.f32.xlu0 %v556_v36 }
 0x73c   : > { %vm553_vm15 = vcmp.eq.f32.partialorder %v545_v29, %v551_v37 }
 0x73d   : > { %v555_v39 = vsel %vm553_vm15, %v953_v38, inf }
 0x73e   : > { %v559_v40 = vsel %vm435_vm9, %v555_v39, inf }
 0x73f   : > { %560 = vmin.xlane.f32.xlu1 %v559_v40 }
 0x7c8   : > { %v1051_v42 = vpop.xlane.xlu0 %557 }
 0x7c9   : > { %vm562_vm2 = vcmp.eq.f32.partialorder %v944_v33, %v1051_v42 }
 0x7ca   : > { %vm564_vm3 = vmand %vm552_vm14, %vm562_vm2  ;;  %vm609_vm14 = vcmask 15360   ;;  %vm617_vm2 = vcmask 39936  }
 0x7cb   : > { %v566_v44 = vsel %vm564_vm3, inf, %v544_v26  ;;  %v610_v6 = vsel %vm609_vm14, %v607_v5, %v987_v59  ;;  %vm620_vm3 = vcmask 48128   ;;  %v611_v34 = vsel %vm609_vm14, %v608_v11, %v992_v62 }
 0x7cc   : > { %v1055_v45 = vpop.xlane.xlu1 %560  ;;  %v568_v46 = vsel %vm435_vm9, %v566_v44, inf }
 0x7cd   : > { %vm563_vm4 = vcmp.eq.f32.partialorder %v953_v38, %v1055_v45  ;;  %569 = vmin.xlane.f32.xlu0 %v568_v46 }
 0x7ce   : > { %vm565_vm5 = vmand %vm553_vm15, %vm563_vm4  ;;  %vm612_vm15 = vcmask 23552   ;;  %vm623_vm4 = vcmask 56320  }
 0x7cf   : > { %v567_v48 = vsel %vm565_vm5, inf, %v545_v29  ;;  %v613_v8 = vsel %vm612_vm15, %v610_v6, %v1007_v7  ;;  %v614_v7 = vsel %vm612_vm15, %v611_v34, %v1012_v10 }
 0x7d0   : > { %v571_v49 = vsel %vm435_vm9, %v567_v48, inf  ;;  %v615_v9 = vsel %vm291_vm1, %v613_v8, %v1027_v19  ;;  %v616_v16 = vsel %vm291_vm1, %v614_v7, %v1032_v22 }
 0x7d1   : > { %572 = vmin.xlane.f32.xlu1 %v571_v49  ;;  %v618_v12 = vsel %vm617_vm2, %v615_v9, %v548_v32  ;;  %v619_v50 = vsel %vm617_vm2, %v616_v16, %v551_v37 }
 0x85a   : > { %v570_v51 = vpop.xlane.xlu0 %569 }
 0x85b   : > { %vm574_vm6 = vcmp.eq.f32.partialorder %v566_v44, %v570_v51  ;;  %v621_v47 = vsel %vm620_vm3, %v618_v12, %v570_v51 }
 0x85c   : > { %v576_v52 = vsel %vm574_vm6, %v944_v33, inf }
 0x85d   : > { %v578_v54 = vsel %vm435_vm9, %v576_v52, inf }
 0x85e   : > { %v573_v56 = vpop.xlane.xlu1 %572  ;;  %579 = vmin.xlane.f32.xlu0 %v578_v54 }
 0x85f   : > { %vm575_vm7 = vcmp.eq.f32.partialorder %v567_v48, %v573_v56  ;;  %v622_v17 = vsel %vm620_vm3, %v619_v50, %v573_v56 }
 0x860   : > { %v577_v57 = vsel %vm575_vm7, %v953_v38, inf }
 0x861   : > { %v581_v58 = vsel %vm435_vm9, %v577_v57, inf }
 0x862   : > { %582 = vmin.xlane.f32.xlu1 %v581_v58 }
 0x8eb   : > { %v580_v60 = vpop.xlane.xlu0 %579 }
 0x8ec   : > { %vm584_vm8 = vcmp.eq.f32.partialorder %v944_v33, %v580_v60 }
 0x8ed   : > { %vm586_vm10 = vmand %vm574_vm6, %vm584_vm8 }
 0x8ee   : > { %v588_v61 = vsel %vm586_vm10, inf, %v566_v44 }
 0x8ef   : > { %v583_v63 = vpop.xlane.xlu1 %582  ;;  %v590_v0 = vsel %vm435_vm9, %v588_v61, inf }
 0x8f0   : > { %vm585_vm11 = vcmp.eq.f32.partialorder %v953_v38, %v583_v63  ;;  %591 = vmin.xlane.f32.xlu0 %v590_v0 }
 0x8f1   : > { %vm587_vm12 = vmand %vm575_vm7, %vm585_vm11 }
 0x8f2   : > { %v589_v2 = vsel %vm587_vm12, inf, %v567_v48 }
 0x8f3   : > { %v593_v4 = vsel %vm435_vm9, %v589_v2, inf }
 0x8f4   : > { %594 = vmin.xlane.f32.xlu1 %v593_v4 }
 0x97d   : > { %v592_v59 = vpop.xlane.xlu0 %591 }
 0x97e   : > { %vm596_vm5 = vcmp.eq.f32.partialorder %v588_v61, %v592_v59  ;;  %v624_v14 = vsel %vm623_vm4, %v621_v47, %v592_v59 }
 0x97f   : > { %627 = vst.msk [vmem:[#allocation2] sm:$0xff] %vm282_vm0, %v624_v14  ;;  %v598_v31 = vsel %vm596_vm5, %v944_v33, inf  ;;  %v629_v33 = vsel %vm606_vm13, %v957_v41, %v977_v53 }
 0x980   : > { %v600_v62 = vsel %vm435_vm9, %v598_v31, inf  ;;  %v631_v21 = vsel %vm609_vm14, %v629_v33, %v997_v1 }
 0x981   : > { %v595_v18 = vpop.xlane.xlu1 %594  ;;  %601 = vmin.xlane.f32.xlu0 %v600_v62  ;;  %v633_v22 = vsel %vm612_vm15, %v631_v21, %v1017_v13 }
 0x982   : > { %vm597_vm6 = vcmp.eq.f32.partialorder %v589_v2, %v595_v18  ;;  %v625_v10 = vsel %vm623_vm4, %v622_v17, %v595_v18  ;;  %v635_v23 = vsel %vm291_vm1, %v633_v22, %v1037_v25 }
 0x983   : > { %628 = vst.msk [vmem:[#allocation2 + $0x8] sm:$0xff] %vm282_vm0, %v625_v10  ;;  %v599_v19 = vsel %vm597_vm6, %v953_v38, inf  ;;  %v630_v38 = vsel %vm606_vm13, %v961_v43, %v981_v55  ;;  %v637_v24 = vsel %vm617_vm2, %v635_v23, %v1051_v42 }
 0x984   : > { %v603_v20 = vsel %vm435_vm9, %v599_v19, inf  ;;  %v632_v41 = vsel %vm609_vm14, %v630_v38, %v1001_v3  ;;  %v639_v53 = vsel %vm620_vm3, %v637_v24, %v580_v60 }
 0x985   : > { %604 = vmin.xlane.f32.xlu1 %v603_v20  ;;  %v634_v13 = vsel %vm612_vm15, %v632_v41, %v1021_v15 }
 0x986   : > { %v636_v25 = vsel %vm291_vm1, %v634_v13, %v1041_v27 }
 0x987   : > { %v638_v43 = vsel %vm617_vm2, %v636_v25, %v1055_v45 }
 0x988   : > { %v640_v55 = vsel %vm620_vm3, %v638_v43, %v583_v63 }
 0xa0e   : > { %v602_v1 = vpop.xlane.xlu0 %601 }
 0xa0f   : > { %v641_v26 = vsel %vm623_vm4, %v639_v53, %v602_v1 }
 0xa10   : > { %643 = vst.msk [vmem:[#allocation3] sm:$0xff] %vm282_vm0, %v641_v26 }
 0xa12   : > { %v605_v28 = vpop.xlane.xlu1 %604 }
 0xa13   : > { %v642_v3 = vsel %vm623_vm4, %v640_v55, %v605_v28 }
 0xa14   : > { %644 = vst.msk [vmem:[#allocation3 + $0x8] sm:$0xff] %vm282_vm0, %v642_v3 }
 0xa17   : > { %v648_v29 = vld [vmem:[#allocation3] sm:$0xff] }
 0xa18   : > { %v812_v30 = vtrunc.f32 %v648_v29 }
 0xa1a   : > { %v813_v15 = vcvt.f32.s32 %v812_v30 }
 0xa1b   : > { %v649_v27 = vld [vmem:[#allocation3 + $0x8] sm:$0xff] }
 0xa1c   : > { %652 = vst.msk [vmem:[%s276_s29] sm:$0xff] %vm282_vm0, %v813_v15  ;;  %v814_v32 = vtrunc.f32 %v649_v27 }
 0xa1e   : > { %v815_v35 = vcvt.f32.s32 %v814_v32 }
 0xa20   : > { %653 = vst.msk [vmem:[%s276_s29 + $0x8] sm:$0xff] %vm282_vm0, %v815_v35 }
 0xa21 PF: > { %s13_s14 = sadd.s32 1, %s865_s14   ;;  %s1146_s12 = smov %s861_s13 }
 0xa22   : > { %p10_p5 = scmp.ge.s32.totalorder %s13_s14, 4   ;;  %s1147_s13 = smov %s1149_s15 }
 0xa24   :  { %12 = sbr.rel (!%p10_p5) target bundleno = 2 (0x2), region = 76 }

// kernel: edge_conv_forward.3
= control target key start
LH: loop header
LB: loop body
LE: loop exit
PB: predicated region body
PF: predicated region fallthrough
CT: control target
= control target key end

     0   :  { %10 = vsyncpa [#allocation3], 0  ;;  %s1680_s0 = inlined_call_operand.vmem [shape: f32[2,16,4], index: 0, kind: input, shape index: {}]   ;;  %s1681_s1 = inlined_call_operand.vmem [shape: f32[2,8,16,4], index: 1, kind: input, shape index: {}]   ;;  %s1682_s2 = inlined_call_operand.vmem [shape: f32[4,32], index: 2, kind: input, shape index: {}]   ;;  %s1683_s3 = inlined_call_operand.vmem [shape: f32[4,32], index: 3, kind: input, shape index: {}]   ;;  %s1684_s4 = inlined_call_operand.vmem [shape: f32[1,32], index: 4, kind: input, shape index: {}]   ;;  %s1685_s5 = inlined_call_operand.hbm [shape: f32[2,16,32], index: 5, kind: output, shape index: {}]  }
   0x1   :  { %12 = vsyncpa [#allocation3 + $0x1], 0  ;;  %s1495_s18 = smov 0   ;;  %s1497_s19 = smov 0  }
   0x2   :  { %s1499_s20 = smov 0   ;;  %s1501_s21 = smov 0  }
   0x3   :  { %s1503_s22 = smov 0   ;;  %s1505_s23 = smov 0  }
   0x4 LB: > { %s1193_s24 = sadd.s32 4294967295, %s1460_s23   ;;  %s1194_s25 = sadd.s32 4294967294, %s1460_s23   ;;  %s1460_s23 = sphi %s1505_s23, %s18_s23   ;;  %s1456_s22 = sphi %s1503_s22, %s1692_s22   ;;  %s1452_s21 = sphi %s1501_s21, %s1691_s21   ;;  %s1448_s20 = sphi %s1499_s20, %s1690_s20   ;;  %s1444_s19 = sphi %s1497_s19, %s1689_s19   ;;  %s1440_s18 = sphi %s1495_s18, %s1688_s18  }
   0x5   : > { %s30_s26 = sadd.s32 1, %s1456_s22  ;;  %s158_s27 = sadd.s32 1, %s1448_s20 }
   0x6   : > { %p32_p0 = scmp.ge.s32.totalorder %s30_s26, 2  ;;  %p168_p1 = scmp.ne.s32.totalorder %s1448_s20, %s1444_s19 }
   0x7   : > { %p169_p2 = scmp.eq.s32.totalorder %s1193_s24, 1  ;;  %p174_p3 = scmp.ne.s32.totalorder %s1444_s19, %s1440_s18 }
   0x8   : > { %s1694_s26 = smov (%p32_p0, %s30_s26), 0  ;;  %p175_p5 = scmp.eq.s32.totalorder %s1194_s25, 1 }
   0x9   : > { %p1535_p4 = por %p169_p2, %p168_p1  ;;  %s153_s29 = ssub.s32 %s1456_s22, %s1694_s26 }
   0xa   : > { %p1197_p6 = scmp.ge.s32.totalorder %s1460_s23, 1  ;;  %p156_p7 = scmp.eq.s32.totalorder %s153_s29, 0 }
   0xb   : > { %p1542_p8 = por %p175_p5, %p174_p3  ;;  %p228_p9 = scmp.lt.s32.totalorder %s1460_s23, 3 }
   0xc   : > { %s1548_s6 = scalar_select %p156_p7, %s1448_s20, %s158_s27  }
   0xd   : > { %p229_p10 = pnand %p1197_p6, %p228_p9 }
   0xe   : > { %v292_v0 = vld [vmem:[%s1682_s2] sm:$0xf] (!%p229_p10)  ;;  %vm308_vm0 = vcmask (!%p229_p10), 1043456   ;;  %p270_p11 = scmp.lt.s32.totalorder (!%p229_p10), %s1452_s21, 1  ;;  %vm301_vm1 = vcmask (!%p229_p10), 31744   ;;  %s266_s27 = sand.u32 (!%p229_p10), 1, %s1444_s19  }
   0xf   : > { %232 = sbr.rel (%p229_p10) target bundleno = 276 (0x114), region = 40  ;;  %1280 = vmatprep.subr.msk.mxu0 (!%p229_p10), %vm308_vm0, %v292_v0  ;;  %v293_v1 = vld [vmem:[%s1683_s3] sm:$0xf] (!%p229_p10)  ;;  %s1198_s29 = sshll.u32 (!%p229_p10), %s266_s27, 4  ;;  %vm1077_vm2 = vcmask (!%p229_p10), 261120  }
  0x10   : > { %1281 = vmatpush3.msk.msra.mxu0 (!%p229_p10), %vm308_vm0, %v292_v0  ;;  %1285 = vmatprep.subr.msk.mxu1 (!%p229_p10), %vm308_vm0, %v293_v1  ;;  %v1203_v45 = vld [vmem:[%s1684_s4] ss:$0 sm:$0xff] (!%p229_p10)  ;;  %s268_s9 = scalar_lea.vmem (!%p229_p10), [#allocation2], %s1198_s29 }
  0x11   : > { %1290 = vmatprep.subr.msk.mxu0 (!%p229_p10), %vm308_vm0, %v293_v1  ;;  %1286 = vmatpush3.msk.msra.mxu1 (!%p229_p10), %vm308_vm0, %v293_v1  ;;  %s1096_s10 = sshll.u32 (!%p229_p10), %s268_s9, 4  ;;  %s1630_s10 = int_to_ptr.vmem [resolvable:$true] %s1096_s10 }
  0x12   : > { %1295 = vmatprep.subr.msk.mxu1 (!%p229_p10), %vm308_vm0, %v293_v1  ;;  %s1382_s15 = scalar_lea.vmem (!%p229_p10), %s1630_s10, 256 }
  0x13   : > { %p1383_p12 = scmp.ne.s32.totalorder (!%p229_p10), %s1630_s10, %s1382_s15 }
  0x15   : > { %p1384_p13 = pnand (!%p229_p10), %p1383_p12, %p1535_p4 }
  0x16   : > { %s271_s11 = scalar_select %p270_p11, %s1452_s21, 1 }
  0x17   : > { %p1385_p0 = pneg %p1384_p13 }
  0x18   : > { %s1250_s12 = sshll.u32 %s271_s11, 4  ;;  %s1251_s13 = sshll.u32 %s271_s11, 7 }
  0x19   : > { %s277_s16 = scalar_lea.vmem %s1680_s0, %s1250_s12  ;;  %s1570_s25 = scalar_lea.vmem %s1681_s1, %s1251_s13 }
  0x1a   : > { %v290_v2 = vld [vmem:[%s277_s16] sm:$0xff]  ;;  %v291_v3 = vld [vmem:[%s277_s16 + $0x8] sm:$0xff]  ;;  %v1210_v6 = vld [vmem:[%s1570_s25 + $0x10] sm:$0xff]  ;;  %s1252_s11 = sshll.u32 %s1452_s21, 8  ;;  %s1634_s21 = scalar_lea.sflag [#allocation3], %s266_s27 }
  0x1b   : > { %v387_v4 = vld [vmem:[%s1570_s25] sm:$0xff]  ;;  %1282 = vmatprep.mubr.msk.f32.mxu0 %vm301_vm1, %v290_v2  ;;  %v388_v5 = vld [vmem:[%s1570_s25 + $0x8] sm:$0xff]  ;;  %v1211_v8 = vld [vmem:[%s1570_s25 + $0x18] sm:$0xff]  ;;  %s1628_s14 = scalar_lea.hbm %s1685_s5, %s1252_s11  ;;  %s1462_s16 = smov [#allocation2]  }
  0x1c   : > { %1287 = vmatprep.mubr.msk.f32.mxu1 %vm301_vm1, %v387_v4  ;;  %1283 = vmatmul.mubr.msk.f32.vlgmr.msra.gmra.mrb[0].mxu0 %vm301_vm1, %v291_v3  ;;  %v1215_v7 = vld [vmem:[%s1570_s25 + $0x20] sm:$0xff]  ;;  %v1216_v9 = vld [vmem:[%s1570_s25 + $0x28] sm:$0xff]  ;;  %v1220_v10 = vld [vmem:[%s1570_s25 + $0x30] sm:$0xff]  ;;  %s1386_s17 = sshll.u32 %s1462_s16, 4  ;;  %s1387_s17 = int_to_ptr.vmem [resolvable:$false] %s1386_s17 }
  0x1d   : > { %1288 = vmatmul.mubr.msk.f32.vlgmr.msra.gmra.mrb[0].mxu1 %vm301_vm1, %v388_v5  ;;  %1291 = vmatpush3.msk.msra.mxu0 %vm308_vm0, %v293_v1  ;;  %v1225_v11 = vld [vmem:[%s1570_s25 + $0x40] sm:$0xff]  ;;  %v1221_v12 = vld [vmem:[%s1570_s25 + $0x38] sm:$0xff]  ;;  %v1226_v13 = vld [vmem:[%s1570_s25 + $0x48] sm:$0xff]  ;;  %s1388_s24 = scalar_lea.vmem %s1387_s17, 512  ;;  %p1389_p1 = scmp.lt.s32.totalorder %s1630_s10, %s1387_s17 }
  0x1e   : > { %1296 = vmatpush3.msk.msra.mxu1 %vm308_vm0, %v293_v1  ;;  %1292 = vmatprep.mubr.msk.f32.mxu0 %vm301_vm1, %v1210_v6  ;;  %v1230_v14 = vld [vmem:[%s1570_s25 + $0x50] sm:$0xff]  ;;  %v1235_v15 = vld [vmem:[%s1570_s25 + $0x60] sm:$0xff]  ;;  %v1231_v16 = vld [vmem:[%s1570_s25 + $0x58] sm:$0xff]  ;;  %p1390_p2 = scmp.lt.s32.totalorder %s1388_s24, %s1382_s15 }
  0x1f   : > { %1300 = vmatprep.subr.msk.mxu0 %vm308_vm0, %v293_v1  ;;  %1297 = vmatprep.mubr.msk.f32.mxu1 %vm301_vm1, %v1215_v7  ;;  %v1236_v17 = vld [vmem:[%s1570_s25 + $0x68] sm:$0xff]  ;;  %v1240_v18 = vld [vmem:[%s1570_s25 + $0x70] sm:$0xff]  ;;  %v1241_v19 = vld [vmem:[%s1570_s25 + $0x78] sm:$0xff] }
  0x20   : > { %1305 = vmatprep.subr.msk.mxu1 %vm308_vm0, %v293_v1  ;;  %1293 = vmatmul.mubr.msk.f32.vlgmr.msra.gmra.mrb[2].mxu0 %vm301_vm1, %v1211_v8  ;;  %p1391_p3 = por %p1390_p2, %p1389_p1 }
  0x21   : > { %1298 = vmatmul.mubr.msk.f32.vlgmr.msra.gmra.mrb[2].mxu1 %vm301_vm1, %v1216_v9  ;;  %1301 = vmatpush3.msk.msra.mxu0 %vm308_vm0, %v293_v1 }
  0x22   : > { %1306 = vmatpush3.msk.msra.mxu1 %vm308_vm0, %v293_v1  ;;  %1302 = vmatprep.mubr.msk.f32.mxu0 %vm301_vm1, %v1220_v10  ;;  %p1392_p5 = pnand %p1391_p3, %p1385_p0 }
  0x23   : > { %1310 = vmatprep.subr.msk.mxu0 %vm308_vm0, %v293_v1  ;;  %1307 = vmatprep.mubr.msk.f32.mxu1 %vm301_vm1, %v1225_v11 }
  0x24   : > { %1315 = vmatprep.subr.msk.mxu1 %vm308_vm0, %v293_v1  ;;  %1303 = vmatmul.mubr.msk.f32.vlgmr.msra.gmra.mrb[4].mxu0 %vm301_vm1, %v1221_v12 }
  0x25   : > { %1308 = vmatmul.mubr.msk.f32.vlgmr.msra.gmra.mrb[4].mxu1 %vm301_vm1, %v1226_v13  ;;  %1311 = vmatpush3.msk.msra.mxu0 %vm308_vm0, %v293_v1 }
  0x26   : > { %1316 = vmatpush3.msk.msra.mxu1 %vm308_vm0, %v293_v1  ;;  %1312 = vmatprep.mubr.msk.f32.mxu0 %vm301_vm1, %v1230_v14 }
  0x27   : > { %1320 = vmatprep.subr.msk.mxu0 %vm308_vm0, %v293_v1  ;;  %1317 = vmatprep.mubr.msk.f32.mxu1 %vm301_vm1, %v1235_v15 }
  0x28   : > { %1313 = vmatmul.mubr.msk.f32.vlgmr.msra.gmra.mrb[6].mxu0 %vm301_vm1, %v1231_v16 }
  0x29   : > { %1318 = vmatmul.mubr.msk.f32.vlgmr.msra.gmra.mrb[6].mxu1 %vm301_vm1, %v1236_v17  ;;  %1321 = vmatpush3.msk.msra.mxu0 %vm308_vm0, %v293_v1 }
  0x2a   : > { %1322 = vmatprep.mubr.msk.f32.mxu0 %vm301_vm1, %v1240_v18 }
  0x2c   : > { %1323 = vmatmul.mubr.msk.f32.vlgmr.msra.gmra.mrb[8].mxu0 %vm301_vm1, %v1241_v19 }
  0xef   : > { %v1284_v20 = vpop.f32.mrb[0].mxu0 }
  0xf0   : > { %v1289_v21 = vpop.f32.mrb[0].mxu1  ;;  %v378_v22 = vpop.f32.mrb[1].mxu0  ;;  %v384_v50 = vadd.f32 %v1284_v20, %v1203_v45 }
  0xf1   : > { %v464_v23 = vpop.f32.mrb[1].mxu1  ;;  %v379_v53 = vadd.f32 %v1203_v45, %v378_v22 }
  0xf3   : > { %v1294_v24 = vpop.f32.mrb[2].mxu0 }
  0xf4   : > { %v1299_v25 = vpop.f32.mrb[2].mxu1  ;;  %v558_v26 = vmax.f32 %v1289_v21, %v1294_v24  ;;  %v548_v27 = vpop.f32.mrb[3].mxu0 }
  0xf5   : > { %v634_v28 = vpop.f32.mrb[3].mxu1  ;;  %v557_v29 = vmax.f32 %v464_v23, %v548_v27 }
  0xf6   : > { %v644_v30 = vmax.f32 %v558_v26, %v1299_v25 }
  0xf7   : > { %v643_v31 = vmax.f32 %v557_v29, %v634_v28  ;;  %v1304_v32 = vpop.f32.mrb[4].mxu0 }
  0xf8   : > { %v1309_v33 = vpop.f32.mrb[4].mxu1  ;;  %v730_v34 = vmax.f32 %v644_v30, %v1304_v32  ;;  %v720_v35 = vpop.f32.mrb[5].mxu0 }
  0xf9   : > { %v806_v36 = vpop.f32.mrb[5].mxu1  ;;  %v729_v37 = vmax.f32 %v643_v31, %v720_v35 }
  0xfa   : > { %v816_v38 = vmax.f32 %v730_v34, %v1309_v33 }
  0xfb   : > { %v815_v39 = vmax.f32 %v729_v37, %v806_v36  ;;  %v1314_v40 = vpop.f32.mrb[6].mxu0 }
  0xfc   : > { %v1319_v41 = vpop.f32.mrb[6].mxu1  ;;  %v902_v42 = vmax.f32 %v816_v38, %v1314_v40  ;;  %v892_v43 = vpop.f32.mrb[7].mxu0 }
  0xfd   : > { %v978_v44 = vpop.f32.mrb[7].mxu1  ;;  %v901_v46 = vmax.f32 %v815_v39, %v892_v43 }
  0xfe   : > { %v988_v47 = vmax.f32 %v902_v42, %v1319_v41 }
  0xff   : > { %v987_v48 = vmax.f32 %v901_v46, %v978_v44  ;;  %v1324_v49 = vpop.f32.mrb[8].mxu0 }
 0x100   : > { %v1074_v51 = vmax.f32 %v988_v47, %v1324_v49  ;;  %v1064_v52 = vpop.f32.mrb[9].mxu0 }
 0x101   : > { %v1073_v54 = vmax.f32 %v987_v48, %v1064_v52 }
 0x102   : > { %v1076_v55 = vadd.f32 %v1074_v51, %v384_v50 }
 0x103   : > { %v1075_v56 = vadd.f32 %v1073_v54, %v379_v53 }
 0x104   : > { %1079 = vst.msk [vmem:[%s268_s9 + $0x8] sm:$0xff] %vm1077_vm2, %v1076_v55 }
 0x105   : > { %1078 = vst.msk [vmem:[%s268_s9] sm:$0xff] %vm1077_vm2, %v1075_v56 }
 0x106   : > { %1395 = shalt.err (!%p1392_p5)
}
 0x107   : > { %s1396_s25 = scalar_lea.hbm %s1628_s14, 256  ;;  %s1400_s7 = scalar_lea.hbm %s1685_s5, 512 }
 0x108   : > { %p1397_p6 = scmp.ne.s32.totalorder %s1628_s14, %s1396_s25  ;;  %p1401_p10 = scmp.lt.u32.totalorder %s1628_s14, %s1685_s5 }
 0x109   : > { %p1402_p11 = scmp.lt.u32.totalorder %s1400_s7, %s1396_s25  ;;  %p1404_p13 = scmp.lt.u32.totalorder %s1396_s25, %s1628_s14 }
 0x10a   : > { %p1398_p7 = pnand %p1397_p6, %p1535_p4 }
 0x10b   : > { %p1403_p12 = por %p1402_p11, %p1401_p10 }
 0x10c   : > { %p1399_p9 = pneg %p1398_p7 }
 0x10d   : > { %p1405_p0 = por %p1404_p13, %p1403_p12 }
 0x10f   : > { %p1406_p1 = pnand %p1405_p0, %p1399_p9 }
 0x111   : > { %1409 = shalt.err (!%p1406_p1)
}
 0x112   : > { %s1463_s11 = smov 128   ;;  %s1464_s12 = smov 8  }
 0x113   : > { %1325 = dma.vmem_to_hbm [thread:$0]  (%p1535_p4), %s1630_s10, 256, %s1628_s14, %s1634_s21, %s1463_s11, %s1463_s11, %s1464_s12  }
 0x114 PF: > { %p1331_p2 = scmp.ge.s32.totalorder %s1460_s23, 2  ;;  %s1111_s13 = sand.u32 1, %s1440_s18  }
 0x115   : > { %s1112_s15 = scalar_lea.sflag [#allocation3], %s1111_s13 }
 0x116   : > { %p1328_p3 = pnand %p1331_p2, %p1542_p8 }
 0x118   : > { %1435 = dma.done.wait (!%p1328_p3), %s1112_s15, 256  }
 0x119   : > { %1437 = vsyncadd (!%p1328_p3), %s1112_s15, 4294967040  ;;  %s18_s23 = sadd.s32 1, %s1460_s23   ;;  %s1688_s18 = smov %s1444_s19 }
 0x11a   : > { %p15_p5 = scmp.ge.s32.totalorder %s18_s23, 4   ;;  %s1689_s19 = smov %s1448_s20 }
 0x11b   : > { %s1690_s20 = smov %s1548_s6  ;;  %s1691_s21 = smov %s1456_s22 }
 0x11c   : > { %s1692_s22 = smov %s1694_s26  ;;  %17 = sbr.rel (!%p15_p5) target bundleno = 4 (0x4), region = 85 }
 0x123   :  { %1117 = vsyncpa [#allocation3], 1 }
 0x124   :  { %1119 = vsyncpa [#allocation3 + $0x1], 1 }

</bundles_post_ra>
